<compile_context>
chip_gen: v7x
topology: tpu7x:2x2x1
jax: 0.10.0
libtpu: 0.0.40
codegen_flags: <defaults>
</compile_context>

<pallas_src>
import functools

import jax
import jax.numpy as jnp
from jax.experimental import pallas as pl
from jax.experimental.pallas import tpu as pltpu


def _mlp_kernel(x_ref, b1e_ref, w1x_ref, w2_ref, b2_ref, w3t_ref, b3t_ref, o_ref):
    """One (batch, row-tile) step of the fused 3-layer MLP.

    x_ref   : (1, ts, d_in)    input rows
    b1e_ref : (1, 1, hidden)   per-batch fc1 bias, condition already folded in (f32)
    w1x_ref : (d_in, hidden)   fc1 weight rows that multiply x       (compute dtype)
    w2_ref  : (hidden, hidden)                                        (compute dtype)
    b2_ref  : (1, hidden)                                             (f32)
    w3t_ref : (d_in, hidden)   fc3 weight, pre-transposed             (compute dtype)
    b3t_ref : (d_in, 1)                                               (f32)
    o_ref   : (1, d_in, ts)    lane-dense output tile
    """
    w1x = w1x_ref[...]
    cdt = w1x.dtype                                     # MXU operand dtype

    x = x_ref[0].astype(cdt)                            # (ts, d_in)

    h = jnp.dot(x, w1x, preferred_element_type=jnp.float32)
    h = jnp.maximum(h + b1e_ref[0], 0.0)                # relu(fc1), f32 elementwise

    h = jnp.dot(h.astype(cdt), w2_ref[...], preferred_element_type=jnp.float32)
    h = jnp.maximum(h + b2_ref[...], 0.0)               # relu(fc2), f32 elementwise

    # fc3, emitted transposed: (d_in, ts) so the last (lane) dim is the row tile.
    out_t = jax.lax.dot_general(
        w3t_ref[...], h.astype(cdt),
        dimension_numbers=(((1,), (1,)), ((), ())),
        preferred_element_type=jnp.float32)             # (d_in, ts)
    o_ref[0] = (out_t + b3t_ref[...]).astype(o_ref.dtype)


@functools.partial(jax.jit, static_argnames=("seq_tile", "compute_dtype"))
def diffusion_model_forward(x, condition, params, *, seq_tile=2048,
                            compute_dtype=jnp.bfloat16):
    B, S, d_in = x.shape
    w1, b1, w2, b2, w3, b3 = (params["w1"], params["b1"], params["w2"],
                              params["b2"], params["w3"], params["b3"])
    hidden = w2.shape[0]
    assert seq_tile % 128 == 0

    # ---- Wrapper-side prep (tiny, once per call, not per row) -------------------
    # Split fc1: rows [:d_in] multiply x; rows [d_in:] multiply the condition and are
    # folded into a per-batch bias (algebraically identical to the concat formulation).
    w1x = w1[:d_in].astype(compute_dtype)                        # (d_in, hidden)
    b1_eff = (b1 + condition @ w1[d_in:]).reshape(B, 1, hidden)  # (B, 1, hidden) f32
    w2c = w2.astype(compute_dtype)                               # (hidden, hidden)
    w3t = w3.T.astype(compute_dtype)                             # (d_in, hidden)
    b3t = b3.reshape(d_in, 1)                                    # (d_in, 1) f32

    # ---- Row tile / grid ---------------------------------------------------------
    ts = S if S <= seq_tile else seq_tile
    # v7x has 2 TensorCores: keep >=2 grid steps when S can be split into
    # lane-aligned (multiple-of-128) tiles. Irrelevant on v5e/v6e (1 TC).
    if B * pl.cdiv(S, ts) < 2 and S > 128:
        ts = max(128, (S // 2) // 128 * 128)
    grid = (B, pl.cdiv(S, ts))

    # ---- VMEM budgeting ----------------------------------------------------------
    csize = jnp.dtype(compute_dtype).itemsize
    xsize = jnp.dtype(x.dtype).itemsize
    w_bytes = (d_in * hidden + hidden * hidden + hidden * d_in) * csize
    big_weights = w_bytes >= (4 << 20)
    # Constant-index weight blocks stay resident anyway; don't double-buffer big ones.
    w_kw = dict(pipeline_mode=pl.Buffered(1)) if big_weights else {}
    vmem_est = (2 * ts * d_in * xsize             # x tiles (double-buffered)
                + 2 * d_in * ts * xsize           # out tiles (double-buffered)
                + 2 * ts * hidden * 4             # live f32 activations
                + (1 if big_weights else 2) * w_bytes
                + 4 * hidden * 4 + 2 * d_in * 4)
    cp_kwargs = dict(dimension_semantics=("parallel", "parallel"))
    if vmem_est > (24 << 20):                     # leave headroom under v7x's 64 MiB
        cp_kwargs["vmem_limit_bytes"] = int(min(max(vmem_est * 5 // 4, 32 << 20),
                                                64 << 20))

    flops = 2 * B * S * (d_in * hidden + hidden * hidden + hidden * d_in)
    bytes_accessed = int(x.size * xsize + B * S * d_in * xsize + w_bytes
                         + B * hidden * 4 + hidden * 4 + d_in * 4)

    out_t = pl.pallas_call(
        _mlp_kernel,
        out_shape=jax.ShapeDtypeStruct((B, d_in, S), x.dtype),
        grid=grid,
        in_specs=[
            pl.BlockSpec((1, ts, d_in), lambda b, s: (b, s, 0)),           # x rows
            pl.BlockSpec((1, 1, hidden), lambda b, s: (b, 0, 0)),          # b1_eff
            pl.BlockSpec((d_in, hidden), lambda b, s: (0, 0), **w_kw),     # w1[:d_in]
            pl.BlockSpec((hidden, hidden), lambda b, s: (0, 0), **w_kw),   # w2
            pl.BlockSpec((1, hidden), lambda b, s: (0, 0)),                # b2
            pl.BlockSpec((d_in, hidden), lambda b, s: (0, 0), **w_kw),     # w3^T
            pl.BlockSpec((d_in, 1), lambda b, s: (0, 0)),                  # b3 (column)
        ],
        out_specs=pl.BlockSpec((1, d_in, ts), lambda b, s: (b, 0, s)),
        compiler_params=pltpu.CompilerParams(**cp_kwargs),
        cost_estimate=pl.CostEstimate(flops=flops, transcendentals=0,
                                      bytes_accessed=bytes_accessed),
    )(x, b1_eff, w1x, w2c, b2, w3t, b3t)

    # Kernel writes (B, d_in, S) so its stores are lane-dense; restore the module's
    # (B, S, d_in) layout here.
    return jnp.swapaxes(out_t, 1, 2)


def init_params(key, input_dim, condition_dim, hidden_dim):
    """Deterministic init mimicking PyTorch nn.Linear default U(-1/sqrt(fan_in), +)."""
    ks = jax.random.split(key, 8)

    def linear(kw, kb, fan_in, fan_out):
        bound = 1.0 / jnp.sqrt(float(fan_in))
        w = jax.random.uniform(kw, (fan_in, fan_out), jnp.float32, -bound, bound)
        b = jax.random.uniform(kb, (1, fan_out), jnp.float32, -bound, bound)
        return w, b

    w1, b1 = linear(ks[0], ks[1], input_dim + condition_dim, hidden_dim)
    w2, b2 = linear(ks[2], ks[3], hidden_dim, hidden_dim)
    w3, b3 = linear(ks[4], ks[5], hidden_dim, input_dim)
    # self.condition_embed exists in __init__ but is never used in forward().
    cond_embed = jax.random.normal(ks[6], (condition_dim, hidden_dim), jnp.float32)
    return {"w1": w1, "b1": b1, "w2": w2, "b2": b2, "w3": w3, "b3": b3,
            "condition_embed": cond_embed}


def _reference(x, condition, params):
    B, S, _ = x.shape
    cond = jnp.broadcast_to(condition[:, None, :], (B, S, condition.shape[-1]))
    h = jnp.concatenate([x, cond], axis=2)
    h = jax.nn.relu(h @ params["w1"] + params["b1"][0])
    h = jax.nn.relu(h @ params["w2"] + params["b2"][0])
    return h @ params["w3"] + params["b3"][0]


if __name__ == "__main__":
    input_dim, condition_dim, hidden_dim = 4, 1, 32
    B, S = 2, 8

    key = jax.random.PRNGKey(0)
    k_x, k_c, k_p = jax.random.split(key, 3)
    x = jax.random.normal(k_x, (B, S, input_dim), jnp.float32)
    condition = jax.random.normal(k_c, (B, condition_dim), jnp.float32)
    params = init_params(k_p, input_dim, condition_dim, hidden_dim)

    ref = _reference(x, condition, params)

    # Exact-math path (f32 MXU operands) -- must match the f32 reference tightly.
    out_f32 = jax.block_until_ready(
        diffusion_model_forward(x, condition, params, compute_dtype=jnp.float32))
    assert out_f32.shape == (B, S, input_dim)
    assert jnp.allclose(out_f32, ref, atol=1e-5, rtol=1e-5)

    # Production path (bf16 MXU operands, f32 accumulation / elementwise).
    out_bf16 = jax.block_until_ready(diffusion_model_forward(x, condition, params))
    assert out_bf16.shape == (B, S, input_dim)
    assert jnp.allclose(out_bf16, ref, atol=5e-2, rtol=5e-2)

    print("KERNEL_OK")
</pallas_src>

<mosaic_0001>
module attributes {stable_mosaic.version = 11 : i64} {
  func.func @_mlp_kernel(%arg0: i32, %arg1: i32, %arg2: memref<1x8x4xf32, #tpu.memory_space<vmem>>, %arg3: memref<1x1x32xf32, #tpu.memory_space<vmem>>, %arg4: memref<4x32xf32, #tpu.memory_space<vmem>>, %arg5: memref<32x32xf32, #tpu.memory_space<vmem>>, %arg6: memref<1x32xf32, #tpu.memory_space<vmem>>, %arg7: memref<4x32xf32, #tpu.memory_space<vmem>>, %arg8: memref<4x1xf32, #tpu.memory_space<vmem>>, %arg9: memref<1x4x8xf32, #tpu.memory_space<vmem>>) attributes {dimension_semantics = [#tpu.dimension_semantics<parallel>, #tpu.dimension_semantics<parallel>], iteration_bounds = array<i64: 2, 1>, scalar_prefetch = 0 : i64, scratch_operands = 0 : i64, tpu.core_type = #tpu.core_type<tc>, window_params = [{transform_indices = @transform_0, window_bounds = array<i64: 1, 8, 4>}, {transform_indices = @transform_1, window_bounds = array<i64: 1, 1, 32>}, {pipeline_mode = #tpu.pipeline_mode<synchronous>, transform_indices = @transform_2, window_bounds = array<i64: 4, 32>}, {pipeline_mode = #tpu.pipeline_mode<synchronous>, transform_indices = @transform_3, window_bounds = array<i64: 32, 32>}, {pipeline_mode = #tpu.pipeline_mode<synchronous>, transform_indices = @transform_4, window_bounds = array<i64: 1, 32>}, {pipeline_mode = #tpu.pipeline_mode<synchronous>, transform_indices = @transform_5, window_bounds = array<i64: 4, 32>}, {pipeline_mode = #tpu.pipeline_mode<synchronous>, transform_indices = @transform_6, window_bounds = array<i64: 4, 1>}, {transform_indices = @transform_7, window_bounds = array<i64: 1, 4, 8>}]} {
    %c0 = arith.constant 0 : index
    %c0_0 = arith.constant 0 : index
    %0 = vector.load %arg4[%c0, %c0_0] : memref<4x32xf32, #tpu.memory_space<vmem>>, vector<4x32xf32>
    %c0_1 = arith.constant 0 : index
    %c0_2 = arith.constant 0 : index
    %c0_3 = arith.constant 0 : index
    %1 = vector.load %arg2[%c0_1, %c0_2, %c0_3] : memref<1x8x4xf32, #tpu.memory_space<vmem>>, vector<1x8x4xf32>
    %2 = vector.shape_cast %1 : vector<1x8x4xf32> to vector<8x4xf32>
    %cst = arith.constant dense<0.000000e+00> : vector<8x32xf32>
    %3 = tpu.matmul %2, %0, %cst {dimension_numbers = #tpu.dot_dimension_numbers<[1], [0], [0], [1], [0, 0, 1, 1], [], []>} : vector<8x4xf32>, vector<4x32xf32>, vector<8x32xf32> -> vector<8x32xf32>
    %c0_4 = arith.constant 0 : index
    %c0_5 = arith.constant 0 : index
    %c0_6 = arith.constant 0 : index
    %4 = vector.load %arg3[%c0_4, %c0_5, %c0_6] : memref<1x1x32xf32, #tpu.memory_space<vmem>>, vector<1x1x32xf32>
    %5 = vector.shape_cast %4 : vector<1x1x32xf32> to vector<1x32xf32>
    %6 = vector.broadcast %5 : vector<1x32xf32> to vector<8x32xf32>
    %7 = arith.addf %3, %6 : vector<8x32xf32>
    %cst_7 = arith.constant 0.000000e+00 : f32
    %8 = vector.broadcast %cst_7 : f32 to vector<8x32xf32>
    %9 = arith.maximumf %7, %8 : vector<8x32xf32>
    %c0_8 = arith.constant 0 : index
    %c0_9 = arith.constant 0 : index
    %10 = vector.load %arg5[%c0_8, %c0_9] : memref<32x32xf32, #tpu.memory_space<vmem>>, vector<32x32xf32>
    %cst_10 = arith.constant dense<0.000000e+00> : vector<8x32xf32>
    %11 = tpu.matmul %9, %10, %cst_10 {dimension_numbers = #tpu.dot_dimension_numbers<[1], [0], [0], [1], [0, 0, 1, 1], [], []>} : vector<8x32xf32>, vector<32x32xf32>, vector<8x32xf32> -> vector<8x32xf32>
    %c0_11 = arith.constant 0 : index
    %c0_12 = arith.constant 0 : index
    %12 = vector.load %arg6[%c0_11, %c0_12] : memref<1x32xf32, #tpu.memory_space<vmem>>, vector<1x32xf32>
    %13 = vector.broadcast %12 : vector<1x32xf32> to vector<8x32xf32>
    %14 = arith.addf %11, %13 : vector<8x32xf32>
    %cst_13 = arith.constant 0.000000e+00 : f32
    %15 = vector.broadcast %cst_13 : f32 to vector<8x32xf32>
    %16 = arith.maximumf %14, %15 : vector<8x32xf32>
    %c0_14 = arith.constant 0 : index
    %c0_15 = arith.constant 0 : index
    %17 = vector.load %arg7[%c0_14, %c0_15] : memref<4x32xf32, #tpu.memory_space<vmem>>, vector<4x32xf32>
    %cst_16 = arith.constant dense<0.000000e+00> : vector<4x8xf32>
    %18 = tpu.matmul %17, %16, %cst_16 {dimension_numbers = #tpu.dot_dimension_numbers<[1], [1], [0], [0], [0, 0, 1, 0], [], []>} : vector<4x32xf32>, vector<8x32xf32>, vector<4x8xf32> -> vector<4x8xf32>
    %c0_17 = arith.constant 0 : index
    %c0_18 = arith.constant 0 : index
    %19 = vector.load %arg8[%c0_17, %c0_18] : memref<4x1xf32, #tpu.memory_space<vmem>>, vector<4x1xf32>
    %20 = vector.broadcast %19 : vector<4x1xf32> to vector<4x8xf32>
    %21 = arith.addf %18, %20 : vector<4x8xf32>
    %c0_19 = arith.constant 0 : index
    %c0_20 = arith.constant 0 : index
    %c0_21 = arith.constant 0 : index
    %22 = vector.load %arg9[%c0_19, %c0_20, %c0_21] : memref<1x4x8xf32, #tpu.memory_space<vmem>>, vector<1x4x8xf32>
    %23 = vector.shape_cast %22 : vector<1x4x8xf32> to vector<4x8xf32>
    %24 = vector.shape_cast %21 : vector<4x8xf32> to vector<1x4x8xf32>
    tpu.vector_store %arg9[%c0_19, %c0_20, %c0_21], %24 {strides = array<i32>} : memref<1x4x8xf32, #tpu.memory_space<vmem>>, vector<1x4x8xf32>,
    return
  }
  func.func @transform_0(%arg0: i32, %arg1: i32) -> (i32, i32, i32) {
    %c0_i32 = arith.constant 0 : i32
    %c0_i32_0 = arith.constant 0 : i32
    return %arg0, %arg1, %c0_i32 : i32, i32, i32
  }
  func.func @transform_1(%arg0: i32, %arg1: i32) -> (i32, i32, i32) {
    %c0_i32 = arith.constant 0 : i32
    %c0_i32_0 = arith.constant 0 : i32
    %c0_i32_1 = arith.constant 0 : i32
    return %arg0, %c0_i32, %c0_i32_0 : i32, i32, i32
  }
  func.func @transform_2(%arg0: i32, %arg1: i32) -> (i32, i32) {
    %c0_i32 = arith.constant 0 : i32
    %c0_i32_0 = arith.constant 0 : i32
    %c0_i32_1 = arith.constant 0 : i32
    return %c0_i32, %c0_i32_0 : i32, i32
  }
  func.func @transform_3(%arg0: i32, %arg1: i32) -> (i32, i32) {
    %c0_i32 = arith.constant 0 : i32
    %c0_i32_0 = arith.constant 0 : i32
    %c0_i32_1 = arith.constant 0 : i32
    return %c0_i32, %c0_i32_0 : i32, i32
  }
  func.func @transform_4(%arg0: i32, %arg1: i32) -> (i32, i32) {
    %c0_i32 = arith.constant 0 : i32
    %c0_i32_0 = arith.constant 0 : i32
    %c0_i32_1 = arith.constant 0 : i32
    return %c0_i32, %c0_i32_0 : i32, i32
  }
  func.func @transform_5(%arg0: i32, %arg1: i32) -> (i32, i32) {
    %c0_i32 = arith.constant 0 : i32
    %c0_i32_0 = arith.constant 0 : i32
    %c0_i32_1 = arith.constant 0 : i32
    return %c0_i32, %c0_i32_0 : i32, i32
  }
  func.func @transform_6(%arg0: i32, %arg1: i32) -> (i32, i32) {
    %c0_i32 = arith.constant 0 : i32
    %c0_i32_0 = arith.constant 0 : i32
    %c0_i32_1 = arith.constant 0 : i32
    return %c0_i32, %c0_i32_0 : i32, i32
  }
  func.func @transform_7(%arg0: i32, %arg1: i32) -> (i32, i32, i32) {
    %c0_i32 = arith.constant 0 : i32
    %c0_i32_0 = arith.constant 0 : i32
    return %arg0, %c0_i32, %arg1 : i32, i32, i32
  }
}

</mosaic_0001>

<bundles_post_ra>
// kernel: diffusion_model_forward.1
= control target key start
LH: loop header
LB: loop body
LE: loop exit
PB: predicated region body
PF: predicated region fallthrough
CT: control target
= control target key end

     0   :  { %12 = vsyncpa [#allocation3], 0  ;;  %s1048_s0 = inlined_call_operand.vmem [shape: f32[2,8,4], index: 0, kind: input, shape index: {}]   ;;  %s1049_s1 = inlined_call_operand.vmem [shape: f32[2,1,32], index: 1, kind: input, shape index: {}]   ;;  %s1050_s2 = inlined_call_operand.vmem [shape: f32[4,32], index: 2, kind: input, shape index: {}]   ;;  %s1051_s3 = inlined_call_operand.vmem [shape: f32[32,32], index: 3, kind: input, shape index: {}]   ;;  %s1052_s4 = inlined_call_operand.vmem [shape: f32[1,32], index: 4, kind: input, shape index: {}]   ;;  %s1053_s5 = inlined_call_operand.vmem [shape: f32[4,32], index: 5, kind: input, shape index: {}]   ;;  %s1054_s6 = inlined_call_operand.vmem [shape: f32[4,1], index: 6, kind: input, shape index: {}]   ;;  %s1055_s7 = inlined_call_operand.hbm [shape: f32[2,4,8], index: 7, kind: output, shape index: {}]  }
   0x1   :  { %14 = vsyncpa [#allocation3 + $0x1], 0  ;;  %s906_s24 = smov 0   ;;  %s908_s25 = smov 0  }
   0x2   :  { %s910_s26 = smov 0   ;;  %s912_s27 = smov 0  }
   0x3   :  { %s914_s28 = smov 0   ;;  %s916_s29 = smov 0  }
   0x4 LB: > { %s667_s30 = sadd.s32 4294967295, %s859_s29   ;;  %s668_s8 = sadd.s32 4294967294, %s859_s29   ;;  %s859_s29 = sphi %s916_s29, %s20_s29   ;;  %s855_s28 = sphi %s914_s28, %s1062_s28   ;;  %s851_s27 = sphi %s912_s27, %s1061_s27   ;;  %s847_s26 = sphi %s910_s26, %s1060_s26   ;;  %s843_s25 = sphi %s908_s25, %s1059_s25   ;;  %s839_s24 = sphi %s906_s24, %s1058_s24  }
   0x5   : > { %s32_s9 = sadd.s32 1, %s855_s28  ;;  %s200_s10 = sadd.s32 1, %s847_s26 }
   0x6   : > { %p34_p0 = scmp.ge.s32.totalorder %s32_s9, 2  ;;  %p210_p1 = scmp.ne.s32.totalorder %s847_s26, %s843_s25 }
   0x7   : > { %p211_p2 = scmp.eq.s32.totalorder %s667_s30, 1  ;;  %p216_p3 = scmp.ne.s32.totalorder %s843_s25, %s839_s24 }
   0x8   : > { %s1064_s9 = smov (%p34_p0, %s32_s9), 0  ;;  %p217_p5 = scmp.eq.s32.totalorder %s668_s8, 1 }
   0x9   : > { %p946_p4 = por %p211_p2, %p210_p1  ;;  %s195_s12 = ssub.s32 %s855_s28, %s1064_s9 }
   0xa   : > { %p671_p6 = scmp.ge.s32.totalorder %s859_s29, 1  ;;  %p198_p7 = scmp.eq.s32.totalorder %s195_s12, 0 }
   0xb   : > { %p953_p8 = por %p217_p5, %p216_p3  ;;  %p266_p9 = scmp.lt.s32.totalorder %s859_s29, 3 }
   0xc   : > { %s959_s14 = scalar_select %p198_p7, %s847_s26, %s200_s10  }
   0xd   : > { %p267_p10 = pnand %p671_p6, %p266_p9 }
   0xe   : > { %v313_v0 = vld [vmem:[%s1050_s2] sm:$0xf] (!%p267_p10)  ;;  %vm326_vm0 = vcmask (!%p267_p10), 1043456   ;;  %p303_p11 = scmp.lt.s32.totalorder (!%p267_p10), %s851_s27, 1  ;;  %v861_v1 = vmov (!%p267_p10), 0.0   ;;  %vm862_vm1 = vmmov (!%p267_p10), 0  }
   0xf   : > { %270 = sbr.rel (%p267_p10) target bundleno = 690 (0x2b2), region = 48  ;;  %694 = vmatprep.subr.mxu0 (!%p267_p10), %v861_v1  ;;  %696 = vmatprep.mubr.msk.f32.mxu0 (!%p267_p10), %vm862_vm1, %v861_v1  ;;  %v401_v2 = vld [vmem:[%s1051_s3] sm:$0xff] (!%p267_p10)  ;;  %v402_v3 = vld [vmem:[%s1051_s3 + $0x8] sm:$0xff] (!%p267_p10)  ;;  %v863_v4 = vmov (!%p267_p10), 0.0|0.0   ;;  %vm322_vm2 = vcmask (!%p267_p10), 31744   ;;  %v403_v7 = vld [vmem:[%s1051_s3 + $0x10] sm:$0xff] (!%p267_p10) }
  0x10   : > { %695 = vmatpush3.msk.msra.mxu0 (!%p267_p10), %vm326_vm0, %v313_v0  ;;  %715 = vmatprep.subr.bf16.mxu1 (!%p267_p10), %v863_v4  ;;  %v716_v5 = vpack.c.bf16 (!%p267_p10), %v402_v3, %v401_v2  ;;  %v404_v8 = vld [vmem:[%s1051_s3 + $0x18] sm:$0xff] (!%p267_p10)  ;;  %vm412_vm3 = vcmask (!%p267_p10), 261120   ;;  %v488_v15 = vld [vmem:[%s1054_s6] sm:$0xf] (!%p267_p10)  ;;  %v864_v16 = vmov (!%p267_p10), 0   ;;  %s300_s10 = sand.u32 (!%p267_p10), 1, %s843_s25  }
  0x11   : > { %707 = vmatprep.mubr.msk.f32.mxu1 (!%p267_p10), %vm862_vm1, %v861_v1  ;;  %710 = vmatprep.subr.mxu0 (!%p267_p10), %v861_v1  ;;  %v719_v9 = vpack.c.bf16 (!%p267_p10), %v404_v8, %v403_v7  ;;  %v677_v17 = vld [vmem:[%s1052_s4] ss:$0 sm:$0xff] (!%p267_p10)  ;;  %s672_s12 = sshll.u32 (!%p267_p10), %s300_s10, 2  ;;  %s682_s15 = sshll.u32 (!%p267_p10), %s851_s27, 6  ;;  %vm570_vm4 = vcmask (!%p267_p10), 60416  }
  0x12   : > { %717 = vmatpush3.bf16.msra.mxu1 (!%p267_p10), %v716_v5  ;;  %780 = vset.pattern.permute.xlu0 (!%p267_p10), %v864_v16  ;;  %v487_v22 = vld [vmem:[%s1053_s5] sm:$0xf] (!%p267_p10)  ;;  %s302_s16 = scalar_lea.vmem (!%p267_p10), [#allocation2], %s672_s12  ;;  %s1001_s20 = scalar_lea.hbm (!%p267_p10), %s1055_s7, %s682_s15 }
  0x13   : > { %718 = vmatprep.subr.bf16.mxu1 (!%p267_p10), %v863_v4  ;;  %491 = vperm.xlu0 (!%p267_p10), %780, %v488_v15   ;;  %s587_s17 = sshll.u32 (!%p267_p10), %s302_s16, 4  ;;  %s1003_s17 = int_to_ptr.vmem [resolvable:$true] %s587_s17 }
  0x14   : > { %s781_s23 = scalar_lea.vmem (!%p267_p10), %s1003_s17, 64 }
  0x15   : > { %p782_p12 = scmp.ne.s32.totalorder (!%p267_p10), %s1003_s17, %s781_s23 }
  0x16   : > { %s304_s21 = scalar_select %p303_p11, %s851_s27, 1  ;;  %720 = vmatpush3.bf16.msra.mxu1 %v719_v9 }
  0x17   : > { %p783_p13 = pnand %p782_p12, %p946_p4  ;;  %s865_s27 = smov [#allocation2]  }
  0x18   : > { %s673_s22 = sshll.u32 %s304_s21, 3  ;;  %s312_s19 = scalar_lea.vmem %s1049_s1, %s304_s21 }
  0x19   : > { %s309_s8 = scalar_lea.vmem %s1048_s0, %s673_s22  ;;  %v674_v10 = vld [vmem:[%s312_s19] ss:$0 sm:$0xff]  ;;  %s573_s22 = scalar_lea.sflag [#allocation3], %s300_s10 }
  0x1a   : > { %v314_v6 = vld [vmem:[%s309_s8] sm:$0xff]  ;;  %p784_p0 = pneg %p783_p13  ;;  %s785_s30 = sshll.u32 %s865_s27, 4  ;;  %s786_s30 = int_to_ptr.vmem [resolvable:$false] %s785_s30 }
  0x1b   : > { %697 = vmatmul.mubr.msk.f32.vlgmr.msra.gmra.mrb[0].mxu0 %vm322_vm2, %v314_v6  ;;  %s787_s21 = scalar_lea.vmem %s786_s30, 128  ;;  %p788_p1 = scmp.lt.s32.totalorder %s1003_s17, %s786_s30 }
  0x1c   : > { %712 = vmatprep.mubr.msk.f32.mxu0 %vm862_vm1, %v861_v1  ;;  %p789_p2 = scmp.lt.s32.totalorder %s787_s21, %s781_s23 }
  0x1e   : > { %p790_p3 = por %p789_p2, %p788_p1 }
  0x20   : > { %p791_p5 = pnand %p790_p3, %p784_p0 }
  0x92   : > { %v492_v23 = vpop.permute.xlu0 %491 }
  0xee   : > { %v396_v11 = vpop.f32.mrb[0].mxu0 }
  0xef   : > { %v397_v12 = vadd.f32 %v674_v10, %v396_v11  ;;  %v698_v13 = vpop.f32.mrb[1].mxu0 }
  0xf1   : > { %v400_v14 = vmax.f32 %v397_v12, 0.0 }
  0xf3   : > { %708 = vmatmul.mubr.msk.f32.vlgmr.msra.gmra.mrb[0].mxu1 %vm412_vm3, %v400_v14 }
 0x1c6   : > { %v482_v18 = vpop.f32.mrb[0].mxu1 }
 0x1c7   : > { %v483_v19 = vadd.f32 %v677_v17, %v482_v18  ;;  %v709_v20 = vpop.f32.mrb[1].mxu1 }
 0x1c9   : > { %v486_v21 = vmax.f32 %v483_v19, 0.0 }
 0x1cb   : > { %711 = vmatpush3.xpose.msk.msra.mxu0 %vm412_vm3, %v486_v21 }
 0x1ce   : > { %713 = vmatmul.mubr.msk.f32.vlgmr.msra.gmra.mrb[2].mxu0 %vm412_vm3, %v487_v22 }
 0x2a1   : > { %v566_v24 = vpop.f32.mrb[2].mxu0 }
 0x2a2   : > { %v567_v25 = vadd.f32 %v566_v24, %v492_v23  ;;  %v714_v26 = vpop.f32.mrb[3].mxu0 }
 0x2a4   : > { %571 = vst.msk [vmem:[%s302_s16] sm:$0xf] %vm570_vm4, %v567_v25 }
 0x2a5   : > { %794 = shalt.err (!%p791_p5)
}
 0x2a6   : > { %s795_s8 = scalar_lea.hbm %s1001_s20, 64  ;;  %s799_s15 = scalar_lea.hbm %s1055_s7, 128 }
 0x2a7   : > { %p796_p6 = scmp.ne.s32.totalorder %s1001_s20, %s795_s8  ;;  %p800_p10 = scmp.lt.u32.totalorder %s1001_s20, %s1055_s7 }
 0x2a8   : > { %p801_p11 = scmp.lt.u32.totalorder %s799_s15, %s795_s8  ;;  %p803_p13 = scmp.lt.u32.totalorder %s795_s8, %s1001_s20 }
 0x2a9   : > { %p797_p7 = pnand %p796_p6, %p946_p4 }
 0x2aa   : > { %p802_p12 = por %p801_p11, %p800_p10 }
 0x2ab   : > { %p798_p9 = pneg %p797_p7 }
 0x2ac   : > { %p804_p0 = por %p803_p13, %p802_p12 }
 0x2ae   : > { %p805_p1 = pnand %p804_p0, %p798_p9 }
 0x2b0   : > { %808 = shalt.err (!%p805_p1)
}
 0x2b1   : > { %721 = dma.vmem_to_hbm [thread:$0]  (%p946_p4), %s1003_s17, 64, %s1001_s20, %s573_s22  }
 0x2b2 PF: > { %p727_p2 = scmp.ge.s32.totalorder %s859_s29, 2  ;;  %s599_s19 = sand.u32 1, %s839_s24  }
 0x2b3   : > { %s600_s23 = scalar_lea.sflag [#allocation3], %s599_s19 }
 0x2b4   : > { %p724_p3 = pnand %p727_p2, %p953_p8 }
 0x2b6   : > { %834 = dma.done.wait (!%p724_p3), %s600_s23, 64  }
 0x2b7   : > { %836 = vsyncadd (!%p724_p3), %s600_s23, 4294967232  ;;  %s20_s29 = sadd.s32 1, %s859_s29   ;;  %s1058_s24 = smov %s843_s25 }
 0x2b8   : > { %p17_p5 = scmp.ge.s32.totalorder %s20_s29, 4   ;;  %s1059_s25 = smov %s847_s26 }
 0x2b9   : > { %s1060_s26 = smov %s959_s14  ;;  %s1061_s27 = smov %s855_s28 }
 0x2ba   : > { %s1062_s28 = smov %s1064_s9  ;;  %19 = sbr.rel (!%p17_p5) target bundleno = 4 (0x4), region = 86 }
 0x2c1   :  { %605 = vsyncpa [#allocation3], 1 }
 0x2c2   :  { %607 = vsyncpa [#allocation3 + $0x1], 1 }

</bundles_post_ra>
